<compile_context>
chip_gen: v5e
topology: v5e:2x2
jax: 0.10.0
libtpu: 0.0.40
codegen_flags: <defaults>
</compile_context>

<pallas_src>
import functools

import jax
import jax.numpy as jnp
from jax.experimental import pallas as pl
from jax.experimental.pallas import tpu as pltpu


def _triplet_fewshot_kernel(margin, alpha, size_average,
                            a_ref, p_ref, n_ref, pos_ref, mask_ref, out_ref):
    a = a_ref[...]
    p = p_ref[...]
    n = n_ref[...]

    # distance_positive / distance_negative : sum over feature dim (lane axis)
    dp = jnp.sum((a - p) ** 2, axis=1, keepdims=True)          # (B, 1)
    dn = jnp.sum((a - n) ** 2, axis=1, keepdims=True)          # (B, 1)
    triplet = jnp.maximum(dp - dn + margin, 0.0)               # F.relu

    if not size_average:
        out_ref[0, 0] = jnp.sum(triplet)
        return

    b = jnp.float32(a.shape[0])

    # Penalty: masks are 0/1 *integer* indices in the reference, so
    # `anchor[anchor_mask]` / `positions[anchor_mask]` only ever read rows 0
    # and 1.  Compute the two candidate norms per embedding type once and
    # select per batch row with the mask.
    pos01 = pos_ref[0:2, :]                                               # (2, D)
    na = jnp.sqrt(jnp.sum((a[0:2, :] - pos01) ** 2, axis=1, keepdims=True))   # (2, 1)
    npo = jnp.sqrt(jnp.sum((p[0:2, :] - pos01) ** 2, axis=1, keepdims=True))  # (2, 1)
    nne = jnp.sqrt(jnp.sum((n[0:2, :] - pos01) ** 2, axis=1, keepdims=True))  # (2, 1)

    m = mask_ref[...]                                          # (B, 3) of 0.0/1.0
    am = m[:, 0:1]
    pm = m[:, 1:2]
    nm = m[:, 2:3]
    pen = (am * na[1:2, :] + (1.0 - am) * na[0:1, :]
           + pm * npo[1:2, :] + (1.0 - pm) * npo[0:1, :]
           + nm * nne[1:2, :] + (1.0 - nm) * nne[0:1, :])      # (B, 1)

    avail = jnp.sum(m)                                         # runtime scalar
    safe_avail = jnp.maximum(avail, 1.0)
    # penalty.mean() == sum(pen_rows) / (available_data * B)
    # TODO(synk): PyTorch raises when available_data == 0 (int 0 has no
    # .mean()); we contribute a 0 penalty instead.
    penalty_mean = jnp.where(avail > 0.0,
                             jnp.sum(pen) / (safe_avail * b),
                             jnp.float32(0.0))

    out_ref[0, 0] = jnp.sum(triplet) / b + alpha * penalty_mean


def triplet_fewshot_loss(anchor, positive, negative, target, *,
                         margin, data_idx, positions, alpha=1.0,
                         size_average=True):
    """Returns (loss_scalar, len(anchor)) exactly like the PyTorch module."""
    B, D = anchor.shape
    L = positions.shape[0]

    # Device-side mask construction: no blocking host sync, no recompiles.
    data_idx_arr = jnp.asarray(sorted(int(v) for v in data_idx),
                               dtype=jnp.int32)
    tgt = jnp.asarray(target, dtype=jnp.int32)                           # (B, 3)
    mask = (tgt[:, :, None] == data_idx_arr[None, None, :]).any(axis=-1)
    mask = mask.astype(jnp.float32)                                      # (B, 3)

    kernel = functools.partial(_triplet_fewshot_kernel,
                               float(margin), float(alpha),
                               bool(size_average))

    loss = pl.pallas_call(
        kernel,
        out_shape=jax.ShapeDtypeStruct((1, 1), jnp.float32),
        in_specs=[
            pl.BlockSpec((B, D), lambda: (0, 0)),
            pl.BlockSpec((B, D), lambda: (0, 0)),
            pl.BlockSpec((B, D), lambda: (0, 0)),
            pl.BlockSpec((L, D), lambda: (0, 0)),
            pl.BlockSpec((B, 3), lambda: (0, 0)),
        ],
        out_specs=pl.BlockSpec(memory_space=pltpu.MemorySpace.SMEM),
    )(anchor, positive, negative, positions.astype(jnp.float32), mask)

    return loss[0, 0], B


def _reference(anchor, positive, negative, target, *, margin, data_idx,
               positions, alpha=1.0, size_average=True):
    """Pure-jnp mirror of the PyTorch forward (integer fancy-index gathers)."""
    data_idx_arr = jnp.asarray(sorted(int(v) for v in data_idx), jnp.int32)
    m = (jnp.asarray(target, jnp.int32)[:, :, None] == data_idx_arr).any(-1)
    a_idx = m[:, 0].astype(jnp.int32)
    p_idx = m[:, 1].astype(jnp.int32)
    n_idx = m[:, 2].astype(jnp.int32)
    dp = jnp.sum((anchor - positive) ** 2, axis=1)
    dn = jnp.sum((anchor - negative) ** 2, axis=1)
    tri = jnp.maximum(dp - dn + margin, 0.0)
    if not size_average:
        return jnp.sum(tri)
    avail = jnp.sum(m.astype(jnp.float32))
    pa = jnp.sqrt(jnp.sum((jnp.take(anchor, a_idx, axis=0)
                           - jnp.take(positions, a_idx, axis=0)) ** 2, axis=1))
    pp = jnp.sqrt(jnp.sum((jnp.take(positive, p_idx, axis=0)
                           - jnp.take(positions, p_idx, axis=0)) ** 2, axis=1))
    pn = jnp.sqrt(jnp.sum((jnp.take(negative, n_idx, axis=0)
                           - jnp.take(positions, n_idx, axis=0)) ** 2, axis=1))
    pen_mean = jnp.where(
        avail > 0.0,
        jnp.sum(pa + pp + pn) / (jnp.maximum(avail, 1.0) * anchor.shape[0]),
        0.0)
    return jnp.mean(tri) + alpha * pen_mean


if __name__ == "__main__":
    key = jax.random.PRNGKey(0)
    k1, k2, k3, k4 = jax.random.split(key, 4)

    B, D = 8, 32                       # batch of triplets, embedding dim
    anchor = jax.random.normal(k1, (B, D), dtype=jnp.float32)
    positive = jax.random.normal(k2, (B, D), dtype=jnp.float32)
    negative = jax.random.normal(k3, (B, D), dtype=jnp.float32)

    # Deterministic module "parameters"
    margin = 1.0
    alpha = 1.0
    data_idx = {0, 2, 5}
    positions = jnp.linspace(-1.0, 1.0, 4 * D, dtype=jnp.float32).reshape(4, D)

    # target: (B, 3) source-ids for (anchor, positive, negative)
    target = jax.random.randint(k4, (B, 3), 0, 8)

    loss, n = triplet_fewshot_loss(
        anchor, positive, negative, target,
        margin=margin, data_idx=data_idx, positions=positions,
        alpha=alpha, size_average=True)
    loss = jax.block_until_ready(loss)

    ref = jax.block_until_ready(_reference(
        anchor, positive, negative, target,
        margin=margin, data_idx=data_idx, positions=positions,
        alpha=alpha, size_average=True))

    assert n == B
    assert abs(float(loss) - float(ref)) <= 1e-4 * max(1.0, abs(float(ref))), (
        float(loss), float(ref))
    print("KERNEL_OK")
</pallas_src>

<mosaic_0001>
module attributes {stable_mosaic.version = 11 : i64} {
  func.func @_triplet_fewshot_kernel(%arg0: memref<8x32xf32, #tpu.memory_space<vmem>>, %arg1: memref<8x32xf32, #tpu.memory_space<vmem>>, %arg2: memref<8x32xf32, #tpu.memory_space<vmem>>, %arg3: memref<4x32xf32, #tpu.memory_space<vmem>>, %arg4: memref<8x3xf32, #tpu.memory_space<vmem>>, %arg5: memref<1x1xf32, #tpu.memory_space<smem>>) attributes {dimension_semantics = [], scalar_prefetch = 0 : i64, scratch_operands = 0 : i64, tpu.core_type = #tpu.core_type<tc>} {
    %c0 = arith.constant 0 : index
    %c0_0 = arith.constant 0 : index
    %0 = vector.load %arg0[%c0, %c0_0] : memref<8x32xf32, #tpu.memory_space<vmem>>, vector<8x32xf32>
    %c0_1 = arith.constant 0 : index
    %c0_2 = arith.constant 0 : index
    %1 = vector.load %arg1[%c0_1, %c0_2] : memref<8x32xf32, #tpu.memory_space<vmem>>, vector<8x32xf32>
    %c0_3 = arith.constant 0 : index
    %c0_4 = arith.constant 0 : index
    %2 = vector.load %arg2[%c0_3, %c0_4] : memref<8x32xf32, #tpu.memory_space<vmem>>, vector<8x32xf32>
    %3 = arith.subf %0, %1 : vector<8x32xf32>
    %4 = arith.mulf %3, %3 : vector<8x32xf32>
    %cst = arith.constant dense<0.000000e+00> : vector<8xf32>
    %5 = vector.multi_reduction <add>, %4, %cst [1] : vector<8x32xf32> to vector<8xf32>
    %6 = vector.shape_cast %5 : vector<8xf32> to vector<8x1xf32>
    %7 = arith.subf %0, %2 : vector<8x32xf32>
    %8 = arith.mulf %7, %7 : vector<8x32xf32>
    %cst_5 = arith.constant dense<0.000000e+00> : vector<8xf32>
    %9 = vector.multi_reduction <add>, %8, %cst_5 [1] : vector<8x32xf32> to vector<8xf32>
    %10 = vector.shape_cast %9 : vector<8xf32> to vector<8x1xf32>
    %11 = arith.subf %6, %10 : vector<8x1xf32>
    %cst_6 = arith.constant 1.000000e+00 : f32
    %12 = vector.broadcast %cst_6 : f32 to vector<8x1xf32>
    %13 = arith.addf %11, %12 : vector<8x1xf32>
    %cst_7 = arith.constant 0.000000e+00 : f32
    %14 = vector.broadcast %cst_7 : f32 to vector<8x1xf32>
    %15 = arith.maximumf %13, %14 : vector<8x1xf32>
    %c0_8 = arith.constant 0 : index
    %c0_9 = arith.constant 0 : index
    %16 = vector.load %arg3[%c0_8, %c0_9] : memref<4x32xf32, #tpu.memory_space<vmem>>, vector<2x32xf32>
    %17 = vector.extract_strided_slice %0 {offsets = [0, 0], sizes = [2, 32], strides = [1, 1]} : vector<8x32xf32> to vector<2x32xf32>
    %18 = arith.subf %17, %16 : vector<2x32xf32>
    %19 = arith.mulf %18, %18 : vector<2x32xf32>
    %cst_10 = arith.constant dense<0.000000e+00> : vector<2xf32>
    %20 = vector.multi_reduction <add>, %19, %cst_10 [1] : vector<2x32xf32> to vector<2xf32>
    %21 = vector.shape_cast %20 : vector<2xf32> to vector<2x1xf32>
    %22 = math.sqrt %21 : vector<2x1xf32>
    %23 = vector.extract_strided_slice %1 {offsets = [0, 0], sizes = [2, 32], strides = [1, 1]} : vector<8x32xf32> to vector<2x32xf32>
    %24 = arith.subf %23, %16 : vector<2x32xf32>
    %25 = arith.mulf %24, %24 : vector<2x32xf32>
    %cst_11 = arith.constant dense<0.000000e+00> : vector<2xf32>
    %26 = vector.multi_reduction <add>, %25, %cst_11 [1] : vector<2x32xf32> to vector<2xf32>
    %27 = vector.shape_cast %26 : vector<2xf32> to vector<2x1xf32>
    %28 = math.sqrt %27 : vector<2x1xf32>
    %29 = vector.extract_strided_slice %2 {offsets = [0, 0], sizes = [2, 32], strides = [1, 1]} : vector<8x32xf32> to vector<2x32xf32>
    %30 = arith.subf %29, %16 : vector<2x32xf32>
    %31 = arith.mulf %30, %30 : vector<2x32xf32>
    %cst_12 = arith.constant dense<0.000000e+00> : vector<2xf32>
    %32 = vector.multi_reduction <add>, %31, %cst_12 [1] : vector<2x32xf32> to vector<2xf32>
    %33 = vector.shape_cast %32 : vector<2xf32> to vector<2x1xf32>
    %34 = math.sqrt %33 : vector<2x1xf32>
    %c0_13 = arith.constant 0 : index
    %c0_14 = arith.constant 0 : index
    %35 = vector.load %arg4[%c0_13, %c0_14] : memref<8x3xf32, #tpu.memory_space<vmem>>, vector<8x3xf32>
    %36 = vector.extract_strided_slice %35 {offsets = [0, 0], sizes = [8, 1], strides = [1, 1]} : vector<8x3xf32> to vector<8x1xf32>
    %37 = vector.extract_strided_slice %35 {offsets = [0, 1], sizes = [8, 1], strides = [1, 1]} : vector<8x3xf32> to vector<8x1xf32>
    %38 = vector.extract_strided_slice %35 {offsets = [0, 2], sizes = [8, 1], strides = [1, 1]} : vector<8x3xf32> to vector<8x1xf32>
    %39 = vector.extract_strided_slice %22 {offsets = [1, 0], sizes = [1, 1], strides = [1, 1]} : vector<2x1xf32> to vector<1x1xf32>
    %40 = vector.broadcast %39 : vector<1x1xf32> to vector<8x1xf32>
    %41 = arith.mulf %36, %40 : vector<8x1xf32>
    %cst_15 = arith.constant 1.000000e+00 : f32
    %42 = vector.broadcast %cst_15 : f32 to vector<8x1xf32>
    %43 = arith.subf %42, %36 : vector<8x1xf32>
    %44 = vector.extract_strided_slice %22 {offsets = [0, 0], sizes = [1, 1], strides = [1, 1]} : vector<2x1xf32> to vector<1x1xf32>
    %45 = vector.broadcast %44 : vector<1x1xf32> to vector<8x1xf32>
    %46 = arith.mulf %43, %45 : vector<8x1xf32>
    %47 = arith.addf %41, %46 : vector<8x1xf32>
    %48 = vector.extract_strided_slice %28 {offsets = [1, 0], sizes = [1, 1], strides = [1, 1]} : vector<2x1xf32> to vector<1x1xf32>
    %49 = vector.broadcast %48 : vector<1x1xf32> to vector<8x1xf32>
    %50 = arith.mulf %37, %49 : vector<8x1xf32>
    %51 = arith.addf %47, %50 : vector<8x1xf32>
    %cst_16 = arith.constant 1.000000e+00 : f32
    %52 = vector.broadcast %cst_16 : f32 to vector<8x1xf32>
    %53 = arith.subf %52, %37 : vector<8x1xf32>
    %54 = vector.extract_strided_slice %28 {offsets = [0, 0], sizes = [1, 1], strides = [1, 1]} : vector<2x1xf32> to vector<1x1xf32>
    %55 = vector.broadcast %54 : vector<1x1xf32> to vector<8x1xf32>
    %56 = arith.mulf %53, %55 : vector<8x1xf32>
    %57 = arith.addf %51, %56 : vector<8x1xf32>
    %58 = vector.extract_strided_slice %34 {offsets = [1, 0], sizes = [1, 1], strides = [1, 1]} : vector<2x1xf32> to vector<1x1xf32>
    %59 = vector.broadcast %58 : vector<1x1xf32> to vector<8x1xf32>
    %60 = arith.mulf %38, %59 : vector<8x1xf32>
    %61 = arith.addf %57, %60 : vector<8x1xf32>
    %cst_17 = arith.constant 1.000000e+00 : f32
    %62 = vector.broadcast %cst_17 : f32 to vector<8x1xf32>
    %63 = arith.subf %62, %38 : vector<8x1xf32>
    %64 = vector.extract_strided_slice %34 {offsets = [0, 0], sizes = [1, 1], strides = [1, 1]} : vector<2x1xf32> to vector<1x1xf32>
    %65 = vector.broadcast %64 : vector<1x1xf32> to vector<8x1xf32>
    %66 = arith.mulf %63, %65 : vector<8x1xf32>
    %67 = arith.addf %61, %66 : vector<8x1xf32>
    %68 = vector.shape_cast %35 : vector<8x3xf32> to vector<1x8x3xf32>
    %cst_18 = arith.constant dense<0.000000e+00> : vector<1xf32>
    %69 = vector.multi_reduction <add>, %68, %cst_18 [1, 2] : vector<1x8x3xf32> to vector<1xf32>
    %70 = vector.shape_cast %69 : vector<1xf32> to vector<1x1x1xf32>
    %71 = vector.extract %70[0, 0, 0] : f32 from vector<1x1x1xf32>
    %cst_19 = arith.constant 1.000000e+00 : f32
    %72 = arith.maximumf %71, %cst_19 : f32
    %cst_20 = arith.constant 0.000000e+00 : f32
    %73 = arith.cmpf ogt, %71, %cst_20 : f32
    %74 = vector.shape_cast %67 : vector<8x1xf32> to vector<1x8x1xf32>
    %cst_21 = arith.constant dense<0.000000e+00> : vector<1xf32>
    %75 = vector.multi_reduction <add>, %74, %cst_21 [1, 2] : vector<1x8x1xf32> to vector<1xf32>
    %76 = vector.shape_cast %75 : vector<1xf32> to vector<1x1x1xf32>
    %77 = vector.extract %76[0, 0, 0] : f32 from vector<1x1x1xf32>
    %cst_22 = arith.constant 8.000000e+00 : f32
    %78 = arith.mulf %72, %cst_22 : f32
    %79 = arith.divf %77, %78 : f32
    %cst_23 = arith.constant 0.000000e+00 : f32
    %80 = arith.select %73, %79, %cst_23 : f32
    %81 = vector.shape_cast %15 : vector<8x1xf32> to vector<1x8x1xf32>
    %cst_24 = arith.constant dense<0.000000e+00> : vector<1xf32>
    %82 = vector.multi_reduction <add>, %81, %cst_24 [1, 2] : vector<1x8x1xf32> to vector<1xf32>
    %83 = vector.shape_cast %82 : vector<1xf32> to vector<1x1x1xf32>
    %84 = vector.extract %83[0, 0, 0] : f32 from vector<1x1x1xf32>
    %cst_25 = arith.constant 8.000000e+00 : f32
    %85 = arith.divf %84, %cst_25 : f32
    %cst_26 = arith.constant 1.000000e+00 : f32
    %86 = arith.mulf %cst_26, %80 : f32
    %87 = arith.addf %85, %86 : f32
    %c0_27 = arith.constant 0 : index
    %c0_28 = arith.constant 0 : index
    %88 = memref.load %arg5[%c0_27, %c0_28] : memref<1x1xf32, #tpu.memory_space<smem>>
    memref.store %87, %arg5[%c0_27, %c0_28] : memref<1x1xf32, #tpu.memory_space<smem>>
    return
  }
}

</mosaic_0001>

<bundles_post_ra>
// kernel: tpu_custom_call.1
= control target key start
LH: loop header
LB: loop body
LE: loop exit
PB: predicated region body
PF: predicated region fallthrough
CT: control target
= control target key end

     0   :  { %10 = vsyncpa [#allocation3], 0  ;;  %s397_s0 = inlined_call_operand.vmem [shape: f32[8,32], index: 0, kind: input, shape index: {}]   ;;  %s398_s1 = inlined_call_operand.hbm [shape: f32[8,32], index: 1, kind: input, shape index: {}]   ;;  %s399_s2 = inlined_call_operand.hbm [shape: f32[8,32], index: 2, kind: input, shape index: {}]   ;;  %s400_s3 = inlined_call_operand.vmem [shape: f32[4,32], index: 3, kind: input, shape index: {}]   ;;  %s401_s4 = inlined_call_operand.vmem [shape: f32[8,3], index: 4, kind: input, shape index: {}]   ;;  %s402_s5 = inlined_call_operand.hbm [shape: f32[1,1], index: 5, kind: output, shape index: {}]  }
   0x1   :  { %11 = vsyncpa [#allocation6], 0 }
   0x2   :  { %12 = vsyncpa [#allocation4], 0  ;;  %s20_s20 = sshll.u32 %s398_s1, 4  ;;  %s329_s21 = smov [#allocation2]   ;;  %s21_s20 = int_to_ptr.hbm [resolvable:$true] %s20_s20 }
   0x3   :  { %s22_s22 = sshll.u32 %s329_s21, 4  ;;  %s31_s25 = sshll.u32 %s399_s2, 4  ;;  %s23_s22 = int_to_ptr.vmem [resolvable:$true] %s22_s22  ;;  %s32_s25 = int_to_ptr.hbm [resolvable:$true] %s31_s25 }
   0x4   :  { %25 = dma.hbm_to_vmem [thread:$0]  %s21_s20, 128, %s23_s22, [#allocation3]  }
   0x5   :  { %s330_s26 = smov [#allocation5]  }
   0x6   :  { %s33_s27 = sshll.u32 %s330_s26, 4  ;;  %s34_s27 = int_to_ptr.vmem [resolvable:$true] %s33_s27 }
   0x7   :  { %36 = dma.hbm_to_vmem [thread:$0]  %s32_s25, 128, %s34_s27, [#allocation6]  }
   0x8   :  { %323 = dma.done.wait [#allocation3], 128  }
   0x9   :  { %324 = vsyncadd [#allocation3], 4294967168 }
   0xa   :  { %325 = dma.done.wait [#allocation6], 128  }
   0xb   :  { %326 = vsyncadd [#allocation6], 4294967168  ;;  %v50_v0 = vld [vmem:[#allocation2] sm:$0xff]  ;;  %v51_v2 = vld [vmem:[#allocation5] sm:$0xff]  ;;  %vm69_vm0 = vcmask 254976   ;;  %vm154_vm1 = vcmask 23552  }
   0xc   :  { %v66_v1 = vld [vmem:[%s400_s3] sm:$0x3]  ;;  %vm54_vm2 = vcmask 261120   ;;  %vm167_vm7 = vcmask 7168   ;;  %s333_s7 = smov 1.0   ;;  %s224_s17 = sshll.u32 %s402_s5, 4  ;;  %s225_s17 = int_to_ptr.hbm [resolvable:$true] %s224_s17 }
   0xd   :  { %v85_v3 = vsub.f32 %v50_v0, %v66_v1  ;;  %v49_v4 = vld [vmem:[%s397_s0] sm:$0xff]  ;;  %v102_v7 = vsub.f32 %v51_v2, %v66_v1  ;;  %s331_s0 = smov 127   ;;  %s335_s20 = smov [#allocation7]  }
   0xe   :  { %v67_v5 = vsub.f32 %v49_v4, %v66_v1  ;;  %v381_v13 = vld [vmem:[%s401_s4] sm:$0xff]  ;;  %v58_v15 = vsub.f32 %v49_v4, %v51_v2  ;;  %v52_v16 = vsub.f32 %v49_v4, %v50_v0  ;;  %s332_s4 = smov 126  }
   0xf   :  { %v86_v6 = vmul.f32 %v85_v3, %v85_v3  ;;  %v103_v11 = vmul.f32 %v102_v7, %v102_v7  ;;  %v155_v14 = vsel %vm154_vm1, %v381_v13, 0.0  ;;  %v122_v44 = vsub.f32 1.0, %v381_v13 }
  0x10   :  { %v68_v8 = vmul.f32 %v67_v5, %v67_v5  ;;  %v59_v17 = vmul.f32 %v58_v15, %v58_v15  ;;  %v53_v18 = vmul.f32 %v52_v16, %v52_v16 }
  0x11   :  { %v87_v9 = vsel %vm69_vm0, %v86_v6, 0.0  ;;  %v104_v12 = vsel %vm69_vm0, %v103_v11, 0.0 }
  0x12   :  { %88 = vadd.xlane.f32.xlu0 %v87_v9  ;;  %v70_v10 = vsel %vm69_vm0, %v68_v8, 0.0  ;;  %v60_v19 = vsel %vm54_vm2, %v59_v17, 0.0  ;;  %v55_v20 = vsel %vm54_vm2, %v53_v18, 0.0 }
  0x13   :  { %71 = vadd.xlane.f32.xlu1 %v70_v10 }
  0x1a   :  { %105 = vadd.xlane.f32.xlu0 %v104_v12 }
  0x1b   :  { %156 = vadd.xlane.f32.xlu1 %v155_v14 }
  0x22   :  { %56 = vadd.xlane.f32.xlu0 %v55_v20 }
  0x23   :  { %61 = vadd.xlane.f32.xlu1 %v60_v19 }
  0x85   :  { %v89_v21 = vpop.xlane.xlu0 %88 }
  0x86   :  { %253 = vrsqrt.f32 %v89_v21  ;;  %vm97_vm3 = vcmp.eq.f32.partialorder %v89_v21, inf  ;;  %v100_v33 = vand.u32 2147483648, %v89_v21  ;;  %vm99_vm4 = vcmp.eq.f32.partialorder %v89_v21, 0.0  ;;  %v72_v52 = vpop.xlane.xlu1 %71 }
  0x87   :  { %vm80_vm8 = vcmp.eq.f32.partialorder %v72_v52, inf  ;;  %v83_v10 = vand.u32 2147483648, %v72_v52  ;;  %vm82_vm9 = vcmp.eq.f32.partialorder %v72_v52, 0.0 }
  0x8c   :  { %v254_v22 = vpop.eup %253 }
  0x8d   :  { %v91_v23 = vmul.f32 %v254_v22, %v89_v21  ;;  %v106_v24 = vpop.xlane.xlu0 %105 }
  0x8e   :  { %255 = vrsqrt.f32 %v106_v24  ;;  %vm114_vm5 = vcmp.eq.f32.partialorder %v106_v24, inf  ;;  %v117_v42 = vand.u32 2147483648, %v106_v24  ;;  %vm116_vm6 = vcmp.eq.f32.partialorder %v106_v24, 0.0  ;;  %v157_v53 = vpop.xlane.xlu1 %156 }
  0x8f   :  { %v92_v25 = vmul.f32 %v254_v22, %v91_v23  ;;  %v158_v54 = vrot.slane %v157_v53, 4  ;;  %257 = vrsqrt.f32 %v72_v52 }
  0x91   :  { %v93_v26 = vmul.f32 0.5, %v92_v25  ;;  %v159_v55 = vadd.f32 %v158_v54, %v157_v53 }
  0x93   :  { %v94_v27 = vsub.f32 1.5, %v93_v26  ;;  %v160_v56 = vrot.slane %v159_v55, 2 }
  0x94   :  { %v256_v28 = vpop.eup %255 }
  0x95   :  { %v108_v29 = vmul.f32 %v256_v28, %v106_v24  ;;  %v95_v30 = vmul.f32 %v254_v22, %v94_v27  ;;  %v57_v58 = vpop.xlane.xlu0 %56  ;;  %v161_v61 = vadd.f32 %v160_v56, %v159_v55  ;;  %v258_v0 = vpop.eup %257 }
  0x96   :  { %v62_v57 = vpop.xlane.xlu1 %61  ;;  %v74_v3 = vmul.f32 %v258_v0, %v72_v52 }
  0x97   :  { %v109_v31 = vmul.f32 %v256_v28, %v108_v29  ;;  %v96_v32 = vmul.f32 %v95_v30, %v89_v21  ;;  %v63_v59 = vsub.f32 %v57_v58, %v62_v57  ;;  %v162_v63 = vrot.slane %v161_v61, 1 }
  0x98   :  { %v75_v4 = vmul.f32 %v258_v0, %v74_v3 }
  0x99   :  { %v110_v34 = vmul.f32 0.5, %v109_v31  ;;  %v98_v35 = vsel %vm97_vm3, %v89_v21, %v96_v32  ;;  %v64_v60 = vadd.f32 1.0, %v63_v59  ;;  %v163_v2 = vadd.f32 %v162_v63, %v161_v61 }
  0x9a   :  { %v101_v36 = vsel %vm99_vm4, %v100_v33, %v98_v35  ;;  %v76_v5 = vmul.f32 0.5, %v75_v4 }
  0x9b   :  { %v126_v37 = vperm.slane %v101_v36, 1  ;;  %v111_v38 = vsub.f32 1.5, %v110_v34  ;;  %v133_v43 = vperm.slane %v101_v36, 0  ;;  %v65_v62 = vmax.f32 %v64_v60, 0.0  ;;  %236 = vpush %v163_v2 }
  0x9c   :  { %v77_v6 = vsub.f32 1.5, %v76_v5 }
  0x9d   :  { %v127_v39 = vmul.f32 %v126_v37, %v381_v13  ;;  %v112_v40 = vmul.f32 %v256_v28, %v111_v38  ;;  %v134_v48 = vmul.f32 %v133_v43, %v122_v44  ;;  %v197_v1 = vsel %vm167_vm7, %v65_v62, 0.0 }
  0x9e   :  { %v78_v7 = vmul.f32 %v258_v0, %v77_v6 }
  0x9f   :  { %129 = vrot.lane.b32.xlu2 %v127_v39, %s331_s0  ;;  %v113_v41 = vmul.f32 %v112_v40, %v106_v24 }
  0xa0   :  { %v79_v8 = vmul.f32 %v78_v7, %v72_v52 }
  0xa1   :  { %v115_v45 = vsel %vm114_vm5, %v106_v24, %v113_v41 }
  0xa2   :  { %v118_v46 = vsel %vm116_vm6, %v117_v42, %v115_v45  ;;  %v81_v11 = vsel %vm80_vm8, %v72_v52, %v79_v8 }
  0xa3   :  { %v147_v47 = vperm.slane %v118_v46, 0  ;;  %v140_v50 = vperm.slane %v118_v46, 1  ;;  %v84_v12 = vsel %vm82_vm9, %v83_v10, %v81_v11 }
  0xa4   :  { %v120_v14 = vperm.slane %v84_v12, 1  ;;  %v123_v15 = vperm.slane %v84_v12, 0 }
  0xa5   :  { %v148_v49 = vmul.f32 %v147_v47, %v122_v44  ;;  %v141_v51 = vmul.f32 %v140_v50, %v381_v13 }
  0xa6   :  { %v121_v17 = vmul.f32 %v120_v14, %v381_v13  ;;  %v124_v18 = vmul.f32 %v123_v15, %v122_v44  ;;  %v334_v13 = vmov 8.0  }
  0xa7   :  { %136 = vrot.lane.b32.xlu2 %v134_v48, %s331_s0  ;;  %150 = vrot.lane.b32.xlu0 %v148_v49, %s332_s4 }
  0xa8   :  { %v125_v19 = vadd.f32 %v124_v18, %v121_v17 }
  0xaf   :  { %143 = vrot.lane.b32.xlu2 %v141_v51, %s332_s4 }
  0xcc   :  { %s390_s6 = spop %236 }
  0xcd   :  { %s165_s8 = smax.f32 %s333_s7, %s390_s6  ;;  %p166_p0 = scmp.gt.f32.partialorder %s390_s6, 0.0 }
  0xce   :  { %s178_s9 = smul.f32 8.0, %s165_s8 }
  0xd0   :  { %v179_v27 = vstv %s178_s9 }
  0xd1   :  { %259 = vrcp.f32 %v179_v27  ;;  %vm185_vm10 = vweird.f32 %v179_v27  ;;  %v191_v44 = vand.u32 2147483648, %v179_v27  ;;  %v189_v47 = vand.u32 2147483647, %v179_v27 }
  0xd2   :  { %261 = vrcp.f32 %v334_v13 }
  0xd3   :  { %v192_v50 = vor.u32 1.1754944e-38, %v191_v44  ;;  %vm190_vm13 = vcmp.eq.f32.partialorder %v189_v47, 8.507059e+37 }
  0xd7   :  { %v260_v29 = vpop.eup %259 }
  0xd8   :  { %198 = vadd.xlane.f32.xlu2 %v197_v1  ;;  %v262_v31 = vpop.eup %261  ;;  %v181_v32 = vmul.f32 %v260_v29, %v179_v27  ;;  %vm186_vm11 = vweird.f32 %v260_v29 }
  0xd9   :  { %v208_v34 = vmul.f32 8.0, %v262_v31  ;;  %vm187_vm12 = vmor %vm185_vm10, %vm186_vm11  ;;  %vm212_vm14 = vweird.f32 %v262_v31 }
  0xda   :  { %v182_v35 = vsub.f32 1.0, %v181_v32 }
  0xdb   :  { %v209_v39 = vsub.f32 1.0, %v208_v34 }
  0xdc   :  { %v183_v40 = vmul.f32 %v260_v29, %v182_v35 }
  0xdd   :  { %v210_v45 = vmul.f32 %v262_v31, %v209_v39 }
  0xde   :  { %v184_v46 = vadd.f32 %v260_v29, %v183_v40 }
  0xdf   :  { %v211_v52 = vadd.f32 %v262_v31, %v210_v45 }
  0xe0   :  { %v188_v53 = vsel %vm187_vm12, %v260_v29, %v184_v46 }
  0xe1   :  { %v193_v55 = vsel %vm190_vm13, %v192_v50, %v188_v53  ;;  %v213_v57 = vsel %vm212_vm14, %v262_v31, %v211_v52 }
  0xf9   :  { %v130_v9 = vpop.permute.xlu2 %129 }
  0xfa   :  { %v132_v20 = vadd.f32 %v130_v9, %v125_v19 }
 0x101   :  { %v137_v16 = vpop.permute.xlu2 %136 }
 0x102   :  { %v139_v22 = vadd.f32 %v137_v16, %v132_v20 }
 0x109   :  { %v144_v21 = vpop.permute.xlu2 %143 }
 0x10a   :  { %v146_v23 = vadd.f32 %v144_v21, %v139_v22 }
 0x119   :  { %v151_v24 = vpop.permute.xlu0 %150 }
 0x11a   :  { %v153_v25 = vadd.f32 %v151_v24, %v146_v23 }
 0x11c   :  { %v168_v26 = vsel %vm167_vm7, %v153_v25, 0.0 }
 0x11d   :  { %169 = vadd.xlane.f32.xlu1 %v168_v26 }
 0x14b   :  { %v199_v28 = vpop.xlane.xlu2 %198 }
 0x14c   :  { %v200_v30 = vrot.slane %v199_v28, 4 }
 0x14e   :  { %v201_v33 = vadd.f32 %v200_v30, %v199_v28 }
 0x150   :  { %v202_v37 = vrot.slane %v201_v33, 2 }
 0x152   :  { %v203_v42 = vadd.f32 %v202_v37, %v201_v33 }
 0x154   :  { %v204_v51 = vrot.slane %v203_v42, 1 }
 0x156   :  { %v205_v56 = vadd.f32 %v204_v51, %v203_v42 }
 0x190   :  { %v170_v36 = vpop.xlane.xlu1 %169 }
 0x191   :  { %v171_v38 = vrot.slane %v170_v36, 4 }
 0x193   :  { %v172_v41 = vadd.f32 %v171_v38, %v170_v36 }
 0x195   :  { %v173_v43 = vrot.slane %v172_v41, 2 }
 0x197   :  { %v174_v48 = vadd.f32 %v173_v43, %v172_v41 }
 0x199   :  { %v175_v49 = vrot.slane %v174_v48, 1 }
 0x19b   :  { %v176_v54 = vadd.f32 %v175_v49, %v174_v48 }
 0x19d   :  { %238 = vpush %v176_v54 }
 0x19e   :  { %240 = vpush %v193_v55 }
 0x19f   :  { %242 = vpush %v205_v56 }
 0x1a0   :  { %244 = vpush %v213_v57 }
 0x1ce   :  { %s239_s10 = spop %238 }
 0x1cf   :  { %s241_s11 = spop %240 }
 0x1d0   :  { %s195_s12 = smul.f32 %s241_s11, %s239_s10  ;;  %s243_s13 = spop %242 }
 0x1d1   :  { %s245_s14 = spop %244 }
 0x1d2   :  { %s404_s12 = smov (!%p166_p0, %s195_s12), 0.0  ;;  %s215_s18 = smul.f32 %s245_s14, %s243_s13 }
 0x1d4   :  { %s216_s19 = sadd.f32 %s215_s18, %s404_s12 }
 0x1d6   :  { %218 = sst [smem:[#allocation7]] %s216_s19 }
 0x1d7   :  { %227 = dma.smem_to_hbm %s335_s20, 16, %s225_s17, [#allocation4]  }
 0x1d8   :  { %327 = dma.done.wait [#allocation4], 16  }
 0x1d9   :  { %328 = vsyncadd [#allocation4], 4294967280 }
 0x1da   :  { %232 = sfence }
 0x1db   :  { %233 = vsyncpa [#allocation3], 1 }
 0x1dc   :  { %234 = vsyncpa [#allocation6], 1 }
 0x1dd   :  { %235 = vsyncpa [#allocation4], 1 }

</bundles_post_ra>
